<compile_context>
chip_gen: v5e
topology: v5e:2x2
jax: 0.10.0
libtpu: 0.0.40
codegen_flags: <defaults>
</compile_context>

<pallas_src>
import functools

import jax
import jax.numpy as jnp
from jax import lax
from jax.experimental import pallas as pl
from jax.experimental.pallas import tpu as pltpu

_LANE = 128


def _pick_channel_tile(C, L, itemsize, budget_bytes=8 << 20):
    """Largest channel tile (multiple of 8, divisor of C, <=128) keeping the
    per-step live footprint ~ 4 * TC * L * itemsize under `budget_bytes`."""
    if C <= 8:
        return C
    max_tc = budget_bytes // max(1, 4 * L * itemsize)
    tc = min(128, C, max(8, (max_tc // 8) * 8))
    tc = max(8, (tc // 8) * 8)
    while tc > 8 and C % tc != 0:
        tc -= 8
    if C % tc != 0:
        tc = C  # full channel dim is always a legal block
    return tc


def _group_norm_masked_kernel(x_ref, m_ref, w_ref, b_ref, o_ref, *, eps):
    # x_ref: (1, TC, L); m_ref: (1, 1, L); w_ref/b_ref: (1, TC, 1) f32.
    x = x_ref[...].astype(jnp.float32)
    m = m_ref[...].astype(jnp.float32)
    xm = x * m

    # Masked first/second moments. Cross-lane reductions run on the XLU,
    # which is a separate bundle slot -- effectively free under the HBM
    # roofline, so no MXU tricks here.
    lengths = jnp.sum(m, axis=-1, keepdims=True)              # (1, 1, 1)
    inv_len = pl.reciprocal(lengths)                          # one reciprocal
    sum1 = jnp.sum(xm, axis=-1, keepdims=True)                # (1, TC, 1)
    sum2 = jnp.sum(xm * xm, axis=-1, keepdims=True)           # (1, TC, 1)

    mean = sum1 * inv_len
    var = sum2 * inv_len - mean * mean + eps
    inv_std = lax.rsqrt(var)

    # Fused affine: y = xm * scale + shift  (2 broadcasts instead of 4).
    scale = inv_std * w_ref[...]
    shift = b_ref[...] - mean * scale
    o_ref[...] = (xm * scale + shift).astype(o_ref.dtype)


def group_norm_masked(x, mask, weight, bias, *, num_groups, eps=1e-5):
    """x: (B, C, L); mask: (B, L) or None; weight/bias: (C,). Returns (B, C, L).

    NOTE: a fully-masked row (lengths == 0) yields NaN/Inf, matching the
    PyTorch module's behavior (division by zero); it is not guarded here.
    """
    B, C, L = x.shape
    assert C % num_groups == 0
    assert C // num_groups == 1, "module asserts one channel per group"

    if mask is None:
        mask = jnp.ones((B, L), dtype=x.dtype)
    mask = mask.astype(x.dtype)

    # Pad L to a lane multiple with zero mask: stores stay lane-dense and the
    # statistics are unchanged (padded frames contribute 0 to every sum).
    L_pad = ((L + _LANE - 1) // _LANE) * _LANE
    if L_pad != L:
        x_p = jnp.pad(x, ((0, 0), (0, 0), (0, L_pad - L)))
        m_p = jnp.pad(mask, ((0, 0), (0, L_pad - L)))
    else:
        x_p, m_p = x, mask
    m_p = m_p.reshape(B, 1, L_pad)

    w = weight.reshape(1, C, 1).astype(jnp.float32)
    b = bias.reshape(1, C, 1).astype(jnp.float32)

    TC = _pick_channel_tile(C, L_pad, jnp.dtype(x.dtype).itemsize)
    grid = (B, C // TC)

    kernel = functools.partial(_group_norm_masked_kernel, eps=eps)

    out = pl.pallas_call(
        kernel,
        out_shape=jax.ShapeDtypeStruct((B, C, L_pad), x.dtype),
        grid_spec=pltpu.PrefetchScalarGridSpec(
            num_scalar_prefetch=0,
            grid=grid,
            in_specs=[
                pl.BlockSpec((1, TC, L_pad), lambda bi, ci: (bi, ci, 0)),  # x
                pl.BlockSpec((1, 1, L_pad), lambda bi, ci: (bi, 0, 0)),    # mask
                pl.BlockSpec((1, TC, 1), lambda bi, ci: (0, ci, 0)),       # weight
                pl.BlockSpec((1, TC, 1), lambda bi, ci: (0, ci, 0)),       # bias
            ],
            out_specs=pl.BlockSpec((1, TC, L_pad), lambda bi, ci: (bi, ci, 0)),
        ),
        compiler_params=pltpu.CompilerParams(
            # Channels are independent groups -> both axes shardable (v7x
            # second TensorCore); neutral on single-core v5e/v6e.
            dimension_semantics=("parallel", "parallel"),
            # Blocks are sized to ~8 MiB live; 32 MiB scoped is safe on all
            # of v5e (128 MiB phys), v6e (128 MiB), v7x (64 MiB).
            vmem_limit_bytes=32 << 20,
        ),
    )(x_p, m_p, w, b)

    if L_pad != L:
        out = out[:, :, :L]
    return out


def _reference(x, mask, weight, bias, num_groups, eps=1e-5):
    # Direct transcription of the PyTorch forward in plain JAX.
    B, C, L = x.shape
    xg = x.reshape(B, num_groups, C // num_groups, L)
    if mask is None:
        mk = jnp.ones_like(xg)
    else:
        mk = mask.reshape(B, 1, 1, L)
    xm = xg * mk
    lengths = jnp.sum(mk, axis=3, keepdims=True)
    mean_ = jnp.mean(xm, axis=3, keepdims=True)
    mean = mean_ * L / lengths
    var = (jnp.var(xm, axis=3, keepdims=True) + mean_ ** 2) * L / lengths - mean ** 2
    var = var + eps
    y = (xm - mean) / jnp.sqrt(var)
    y = y.reshape(B, C, L)
    y = y * weight.reshape(1, -1, 1) + bias.reshape(1, -1, 1)
    return y


if __name__ == "__main__":
    B, C, L = 2, 4, 16
    num_groups = C  # module requires C // num_groups == 1
    eps = 1e-5

    key = jax.random.PRNGKey(0)
    kx, _ = jax.random.split(key)
    x = jax.random.normal(kx, (B, C, L), dtype=jnp.float32)

    # Deterministic mask: first 12 frames valid in batch 0, first 9 in batch 1.
    valid = jnp.array([12, 9], dtype=jnp.int32)
    mask = (jnp.arange(L)[None, :] < valid[:, None]).astype(jnp.float32)  # (B, L)

    # Deterministic parameter init matching reset_parameters(): ones / zeros.
    weight = jnp.ones((C,), dtype=jnp.float32)
    bias = jnp.zeros((C,), dtype=jnp.float32)

    out = group_norm_masked(x, mask, weight, bias, num_groups=num_groups, eps=eps)
    out = jax.block_until_ready(out)

    ref = _reference(x, mask, weight, bias, num_groups, eps=eps)
    assert out.shape == (B, C, L)
    assert jnp.allclose(out, ref, atol=1e-5, rtol=1e-5), "mismatch vs reference"

    # Also exercise the mask=None path once.
    out2 = jax.block_until_ready(
        group_norm_masked(x, None, weight, bias, num_groups=num_groups, eps=eps))
    ref2 = _reference(x, None, weight, bias, num_groups, eps=eps)
    assert jnp.allclose(out2, ref2, atol=1e-5, rtol=1e-5), "mismatch (mask=None)"

    print("KERNEL_OK")
</pallas_src>

<mosaic_0001>
module attributes {stable_mosaic.version = 11 : i64} {
  func.func @_group_norm_masked_kernel(%arg0: i32, %arg1: i32, %arg2: memref<1x4x128xf32, #tpu.memory_space<vmem>>, %arg3: memref<1x1x128xf32, #tpu.memory_space<vmem>>, %arg4: memref<1x4x1xf32, #tpu.memory_space<vmem>>, %arg5: memref<1x4x1xf32, #tpu.memory_space<vmem>>, %arg6: memref<1x4x128xf32, #tpu.memory_space<vmem>>) attributes {dimension_semantics = [#tpu.dimension_semantics<parallel>, #tpu.dimension_semantics<parallel>], iteration_bounds = array<i64: 2, 1>, scalar_prefetch = 0 : i64, scratch_operands = 0 : i64, tpu.core_type = #tpu.core_type<tc>, window_params = [{transform_indices = @transform_0, window_bounds = array<i64: 1, 4, 128>}, {transform_indices = @transform_1, window_bounds = array<i64: 1, 1, 128>}, {transform_indices = @transform_2, window_bounds = array<i64: 1, 4, 1>}, {transform_indices = @transform_3, window_bounds = array<i64: 1, 4, 1>}, {transform_indices = @transform_4, window_bounds = array<i64: 1, 4, 128>}]} {
    %c0 = arith.constant 0 : index
    %c0_0 = arith.constant 0 : index
    %c0_1 = arith.constant 0 : index
    %0 = vector.load %arg2[%c0, %c0_0, %c0_1] : memref<1x4x128xf32, #tpu.memory_space<vmem>>, vector<1x4x128xf32>
    %c0_2 = arith.constant 0 : index
    %c0_3 = arith.constant 0 : index
    %c0_4 = arith.constant 0 : index
    %1 = vector.load %arg3[%c0_2, %c0_3, %c0_4] : memref<1x1x128xf32, #tpu.memory_space<vmem>>, vector<1x1x128xf32>
    %2 = vector.broadcast %1 : vector<1x1x128xf32> to vector<1x4x128xf32>
    %3 = arith.mulf %0, %2 : vector<1x4x128xf32>
    %cst = arith.constant dense<0.000000e+00> : vector<1x1xf32>
    %4 = vector.multi_reduction <add>, %1, %cst [2] : vector<1x1x128xf32> to vector<1x1xf32>
    %5 = vector.shape_cast %4 : vector<1x1xf32> to vector<1x1x1xf32>
    %6 = tpu.reciprocal %5 : vector<1x1x1xf32> -> vector<1x1x1xf32>
    %cst_5 = arith.constant dense<0.000000e+00> : vector<1x4xf32>
    %7 = vector.multi_reduction <add>, %3, %cst_5 [2] : vector<1x4x128xf32> to vector<1x4xf32>
    %8 = vector.shape_cast %7 : vector<1x4xf32> to vector<1x4x1xf32>
    %9 = arith.mulf %3, %3 : vector<1x4x128xf32>
    %cst_6 = arith.constant dense<0.000000e+00> : vector<1x4xf32>
    %10 = vector.multi_reduction <add>, %9, %cst_6 [2] : vector<1x4x128xf32> to vector<1x4xf32>
    %11 = vector.shape_cast %10 : vector<1x4xf32> to vector<1x4x1xf32>
    %12 = vector.broadcast %6 : vector<1x1x1xf32> to vector<1x4x1xf32>
    %13 = arith.mulf %8, %12 : vector<1x4x1xf32>
    %14 = vector.broadcast %6 : vector<1x1x1xf32> to vector<1x4x1xf32>
    %15 = arith.mulf %11, %14 : vector<1x4x1xf32>
    %16 = arith.mulf %13, %13 : vector<1x4x1xf32>
    %17 = arith.subf %15, %16 : vector<1x4x1xf32>
    %cst_7 = arith.constant 9.99999974E-6 : f32
    %18 = vector.broadcast %cst_7 : f32 to vector<1x4x1xf32>
    %19 = arith.addf %17, %18 : vector<1x4x1xf32>
    %20 = math.rsqrt %19 : vector<1x4x1xf32>
    %c0_8 = arith.constant 0 : index
    %c0_9 = arith.constant 0 : index
    %c0_10 = arith.constant 0 : index
    %21 = vector.load %arg4[%c0_8, %c0_9, %c0_10] : memref<1x4x1xf32, #tpu.memory_space<vmem>>, vector<1x4x1xf32>
    %22 = arith.mulf %20, %21 : vector<1x4x1xf32>
    %c0_11 = arith.constant 0 : index
    %c0_12 = arith.constant 0 : index
    %c0_13 = arith.constant 0 : index
    %23 = vector.load %arg5[%c0_11, %c0_12, %c0_13] : memref<1x4x1xf32, #tpu.memory_space<vmem>>, vector<1x4x1xf32>
    %24 = arith.mulf %13, %22 : vector<1x4x1xf32>
    %25 = arith.subf %23, %24 : vector<1x4x1xf32>
    %26 = vector.broadcast %22 : vector<1x4x1xf32> to vector<1x4x128xf32>
    %27 = arith.mulf %3, %26 : vector<1x4x128xf32>
    %28 = vector.broadcast %25 : vector<1x4x1xf32> to vector<1x4x128xf32>
    %29 = arith.addf %27, %28 : vector<1x4x128xf32>
    %c0_14 = arith.constant 0 : index
    %c0_15 = arith.constant 0 : index
    %c0_16 = arith.constant 0 : index
    %30 = vector.load %arg6[%c0_14, %c0_15, %c0_16] : memref<1x4x128xf32, #tpu.memory_space<vmem>>, vector<1x4x128xf32>
    tpu.vector_store %arg6[%c0_14, %c0_15, %c0_16], %29 {strides = array<i32>} : memref<1x4x128xf32, #tpu.memory_space<vmem>>, vector<1x4x128xf32>,
    return
  }
  func.func @transform_0(%arg0: i32, %arg1: i32) -> (i32, i32, i32) {
    %c0_i32 = arith.constant 0 : i32
    %c0_i32_0 = arith.constant 0 : i32
    return %arg0, %arg1, %c0_i32 : i32, i32, i32
  }
  func.func @transform_1(%arg0: i32, %arg1: i32) -> (i32, i32, i32) {
    %c0_i32 = arith.constant 0 : i32
    %c0_i32_0 = arith.constant 0 : i32
    %c0_i32_1 = arith.constant 0 : i32
    return %arg0, %c0_i32, %c0_i32_0 : i32, i32, i32
  }
  func.func @transform_2(%arg0: i32, %arg1: i32) -> (i32, i32, i32) {
    %c0_i32 = arith.constant 0 : i32
    %c0_i32_0 = arith.constant 0 : i32
    %c0_i32_1 = arith.constant 0 : i32
    return %c0_i32, %arg1, %c0_i32_0 : i32, i32, i32
  }
  func.func @transform_3(%arg0: i32, %arg1: i32) -> (i32, i32, i32) {
    %c0_i32 = arith.constant 0 : i32
    %c0_i32_0 = arith.constant 0 : i32
    %c0_i32_1 = arith.constant 0 : i32
    return %c0_i32, %arg1, %c0_i32_0 : i32, i32, i32
  }
  func.func @transform_4(%arg0: i32, %arg1: i32) -> (i32, i32, i32) {
    %c0_i32 = arith.constant 0 : i32
    %c0_i32_0 = arith.constant 0 : i32
    return %arg0, %arg1, %c0_i32 : i32, i32, i32
  }
}

</mosaic_0001>

<bundles_post_ra>
// kernel: tpu_custom_call.1
= control target key start
LH: loop header
LB: loop body
LE: loop exit
PB: predicated region body
PF: predicated region fallthrough
CT: control target
= control target key end

     0   :  { %9 = vsyncpa [#allocation3], 0  ;;  %s846_s0 = inlined_call_operand.vmem [shape: f32[2,4,128], index: 0, kind: input, shape index: {}]   ;;  %s847_s1 = inlined_call_operand.hbm [shape: f32[2,1,128], index: 1, kind: input, shape index: {}]   ;;  %s848_s2 = inlined_call_operand.vmem [shape: f32[1,4,1], index: 2, kind: input, shape index: {}]   ;;  %s849_s3 = inlined_call_operand.vmem [shape: f32[1,4,1], index: 3, kind: input, shape index: {}]   ;;  %s850_s4 = inlined_call_operand.hbm [shape: f32[2,4,128], index: 4, kind: output, shape index: {}]  }
   0x1   :  { %11 = vsyncpa [#allocation3 + $0x1], 0 }
   0x2   :  { %12 = vsyncpa [#allocation4], 0 }
   0x3   :  { %14 = vsyncpa [#allocation4 + $0x1], 0  ;;  %s714_s15 = smov 0   ;;  %s716_s16 = smov 0  }
   0x4   :  { %s718_s17 = smov 0   ;;  %s720_s18 = smov 0  }
   0x5   :  { %s722_s19 = smov 0   ;;  %s724_s20 = smov 0  }
   0x6 LB: > { %s490_s21 = sadd.s32 4294967295, %s686_s20   ;;  %s491_s22 = sadd.s32 4294967294, %s686_s20   ;;  %s686_s20 = sphi %s724_s20, %s20_s20   ;;  %s682_s19 = sphi %s722_s19, %s859_s19   ;;  %s678_s18 = sphi %s720_s18, %s858_s18   ;;  %s674_s17 = sphi %s718_s17, %s857_s17   ;;  %s670_s16 = sphi %s716_s16, %s856_s16   ;;  %s666_s15 = sphi %s714_s15, %s855_s15  }
   0x7   : > { %s32_s23 = sadd.s32 1, %s682_s19  ;;  %s67_s24 = sadd.s32 1, %s674_s17 }
   0x8   : > { %p34_p0 = scmp.ge.s32.totalorder %s32_s23, 2  ;;  %p74_p1 = scmp.ne.s32.totalorder %s674_s17, %s670_s16 }
   0x9   : > { %p75_p2 = scmp.eq.s32.totalorder %s686_s20, 0  ;;  %p80_p3 = scmp.ne.s32.totalorder %s670_s16, %s666_s15 }
   0xa   : > { %s861_s23 = smov (%p34_p0, %s32_s23), 0  ;;  %p81_p5 = scmp.eq.s32.totalorder %s490_s21, 0 }
   0xb   : > { %p755_p4 = por %p75_p2, %p74_p1  ;;  %s64_s26 = ssub.s32 %s682_s19, %s861_s23 }
   0xc   : > { %p158_p6 = scmp.eq.s32.totalorder %s490_s21, 1  ;;  %p65_p7 = scmp.eq.s32.totalorder %s64_s26, 0 }
   0xd   : > { %p761_p8 = por %p81_p5, %p80_p3  ;;  %p164_p10 = scmp.eq.s32.totalorder %s491_s22, 1 }
   0xe   : > { %p765_p9 = por %p158_p6, %p74_p1  ;;  %p495_p12 = scmp.ge.s32.totalorder %s686_s20, 2 }
   0xf   : > { %s770_s29 = scalar_select %p65_p7, %s674_s17, %s67_s24  }
  0x10   : > { %p772_p11 = por %p164_p10, %p80_p3  ;;  %p515_p13 = scmp.lt.s32.totalorder %s686_s20, 2 }
  0x11   : > { %s208_s5 = sand.u32 1, %s674_s17   ;;  %s214_s8 = scalar_lea.hbm %s847_s1, %s682_s19 }
  0x12   : > { %s211_s9 = scalar_lea.vmem [#allocation2], %s208_s5  ;;  %s216_s11 = sshll.u32 %s214_s8, 4  ;;  %s217_s11 = int_to_ptr.hbm [resolvable:$true] %s216_s11 }
  0x13   : > { %s218_s10 = sshll.u32 %s211_s9, 4  ;;  %p508_p0 = pnand %p515_p13, %p755_p4  ;;  %s219_s10 = int_to_ptr.vmem [resolvable:$true] %s218_s10 }
  0x14   : > { %p496_p1 = scmp.ge.s32.totalorder %s686_s20, 1  ;;  %p223_p2 = scmp.lt.s32.totalorder %s686_s20, 3 }
  0x15   : > { %s209_s12 = scalar_lea.sflag [#allocation3], %s208_s5 }
  0x16   : > { %510 = dma.hbm_to_vmem [thread:$0]  (!%p508_p0), %s217_s11, 16, %s219_s10, %s209_s12  }
  0x17   : > { %p224_p3 = pnand %p496_p1, %p223_p2 }
  0x18   : > { %s788_s13 = sand.u32 (!%p224_p3), 1, %s670_s16  }
  0x19   : > { %227 = sbr.rel (%p224_p3) target bundleno = 318 (0x13e), region = 36  ;;  %s230_s14 = scalar_lea.sflag (!%p224_p3), [#allocation3], %s788_s13 }
  0x1a   : > { %s232_s21 = scalar_lea.vmem (!%p224_p3), [#allocation2], %s788_s13 }
  0x1e   : > { %657 = dma.done.wait (%p761_p8), %s230_s14, 16  }
  0x1f   : > { %659 = vsyncadd (%p761_p8), %s230_s14, 4294967280  ;;  %p272_p4 = scmp.lt.s32.totalorder %s678_s18, 1  ;;  %vm293_vm0 = vcmask 1040384   ;;  %v288_v0 = vld [vmem:[%s232_s21] sm:$0x1]  ;;  %vm311_vm1 = vcmask 1043456  }
  0x20   : > { %v569_v2 = vld [vmem:[%s232_s21] ss:$0 sm:$0xff]  ;;  %v294_v3 = vsel %vm293_vm0, %v288_v0, 0.0  ;;  %v688_v17 = vmov 0   ;;  %s497_s9 = sshll.u32 %s788_s13, 2  ;;  %s500_s10 = sshll.u32 %s678_s18, 2 }
  0x21   : > { %s273_s22 = scalar_select %p272_p4, %s678_s18, 1  ;;  %295 = vadd.xlane.f32.xlu0 %v294_v3  ;;  %566 = vset.pattern.permute.xlu1 %v688_v17  ;;  %v335_v33 = vld [vmem:[%s848_s2] sm:$0xf] }
  0x22   : > { %567 = vset.pattern.permute.xlu2 %v688_v17  ;;  %568 = vset.pattern.permute.xlu0 %v688_v17  ;;  %v337_v37 = vld [vmem:[%s849_s3] sm:$0xf]  ;;  %s365_s14 = scalar_lea.hbm %s850_s4, %s500_s10  ;;  %s271_s21 = scalar_lea.vmem [#allocation5], %s497_s9 }
  0x23   : > { %s498_s24 = sshll.u32 %s273_s22, 2  ;;  %s367_s22 = sshll.u32 %s271_s21, 4  ;;  %s368_s22 = int_to_ptr.vmem [resolvable:$true] %s367_s22 }
  0x24   : > { %s278_s5 = scalar_lea.vmem %s846_s0, %s498_s24  ;;  %s369_s24 = sshll.u32 %s365_s14, 4  ;;  %s370_s24 = int_to_ptr.hbm [resolvable:$true] %s369_s24 }
  0x25   : > { %v287_v1 = vld [vmem:[%s278_s5] sm:$0xf]  ;;  %s354_s25 = scalar_lea.sflag [#allocation4], %s788_s13  ;;  %s618_s26 = sshra.s32 %s370_s24, 4  ;;  %s619_s26 = int_to_ptr.hbm [resolvable:$true] %s618_s26 }
  0x26   : > { %v292_v4 = vmul.f32 %v569_v2, %v287_v1  ;;  %s620_s5 = scalar_lea.hbm %s619_s26, 4  ;;  %s624_s6 = scalar_lea.hbm %s850_s4, 8 }
  0x27   : > { %p621_p5 = scmp.ne.s32.totalorder %s619_s26, %s620_s5  ;;  %p625_p8 = scmp.lt.s32.totalorder %s619_s26, %s850_s4 }
  0x28   : > { %v315_v5 = vmul.f32 %v292_v4, %v292_v4  ;;  %v312_v7 = vsel %vm311_vm1, %v292_v4, 0.0  ;;  %p626_p10 = scmp.lt.s32.totalorder %s624_s6, %s620_s5 }
  0x29   : > { %313 = vadd.xlane.f32.xlu0 %v312_v7  ;;  %p622_p6 = pnand %p621_p5, %p765_p9 }
  0x2a   : > { %v316_v6 = vsel %vm311_vm1, %v315_v5, 0.0  ;;  %p627_p13 = por %p626_p10, %p625_p8 }
  0x2b   : > { %317 = vadd.xlane.f32.xlu1 %v316_v6  ;;  %p623_p7 = pneg %p622_p6 }
  0x2d   : > { %p628_p0 = pnand %p627_p13, %p623_p7 }
  0x94   : > { %v296_v8 = vpop.xlane.xlu0 %295 }
  0x95   : > { %570 = vrcp.f32 %v296_v8  ;;  %v308_v12 = vand.u32 2147483648, %v296_v8  ;;  %v306_v14 = vand.u32 2147483647, %v296_v8  ;;  %vm302_vm3 = vweird.f32 %v296_v8 }
  0x97   : > { %v309_v16 = vor.u32 1.1754944e-38, %v308_v12  ;;  %vm307_vm5 = vcmp.eq.f32.partialorder %v306_v14, 8.507059e+37 }
  0x9b   : > { %v571_v9 = vpop.eup %570 }
  0x9c   : > { %v298_v10 = vmul.f32 %v571_v9, %v296_v8  ;;  %vm303_vm2 = vweird.f32 %v571_v9  ;;  %v314_v20 = vpop.xlane.xlu0 %313 }
  0x9d   : > { %vm304_vm4 = vmor %vm302_vm3, %vm303_vm2 }
  0x9e   : > { %v299_v11 = vsub.f32 1.0, %v298_v10  ;;  %v318_v22 = vpop.xlane.xlu1 %317 }
  0xa0   : > { %v300_v13 = vmul.f32 %v571_v9, %v299_v11 }
  0xa2   : > { %v301_v15 = vadd.f32 %v571_v9, %v300_v13 }
  0xa4   : > { %v305_v18 = vsel %vm304_vm4, %v571_v9, %v301_v15 }
  0xa5   : > { %v310_v19 = vsel %vm307_vm5, %v309_v16, %v305_v18 }
  0xa6   : > { %v319_v21 = vperm.slane %v310_v19, 0 }
  0xa8   : > { %v320_v23 = vmul.f32 %v319_v21, %v314_v20  ;;  %v321_v24 = vmul.f32 %v319_v21, %v318_v22 }
  0xaa   : > { %v322_v25 = vmul.f32 %v320_v23, %v320_v23 }
  0xac   : > { %v323_v26 = vsub.f32 %v321_v24, %v322_v25 }
  0xae   : > { %v324_v27 = vadd.f32 1e-05, %v323_v26 }
  0xb0   : > { %572 = vrsqrt.f32 %v324_v27  ;;  %vm331_vm7 = vweird.f32 %v324_v27 }
  0xb6   : > { %v573_v28 = vpop.eup %572 }
  0xb7   : > { %v326_v29 = vmul.f32 %v573_v28, %v324_v27  ;;  %vm332_vm6 = vweird.f32 %v573_v28 }
  0xb8   : > { %vm333_vm8 = vmor %vm331_vm7, %vm332_vm6 }
  0xb9   : > { %v327_v30 = vmul.f32 %v573_v28, %v326_v29 }
  0xbb   : > { %v328_v31 = vmul.f32 0.5, %v327_v30 }
  0xbd   : > { %v329_v32 = vsub.f32 1.5, %v328_v31 }
  0xbf   : > { %v330_v34 = vmul.f32 %v573_v28, %v329_v32 }
  0xc1   : > { %v334_v35 = vsel %vm333_vm8, %v573_v28, %v330_v34 }
  0xc2   : > { %v336_v36 = vmul.f32 %v335_v33, %v334_v35 }
  0xc4   : > { %v338_v38 = vmul.f32 %v336_v36, %v320_v23  ;;  %342 = vperm.xlu1 %566, %v336_v36  }
  0xc6   : > { %v339_v39 = vsub.f32 %v337_v37, %v338_v38 }
  0xc8   : > { %348 = vperm.xlu2 %567, %v339_v39  }
 0x122   : > { %v349_v42 = vpop.permute.xlu2 %348 }
 0x136   : > { %v343_v40 = vpop.permute.xlu1 %342 }
 0x137   : > { %v345_v41 = vmul.f32 %v343_v40, %v292_v4 }
 0x139   : > { %v351_v43 = vadd.f32 %v349_v42, %v345_v41 }
 0x13b   : > { %352 = vst [vmem:[%s271_s21] sm:$0xf] %v351_v43 }
 0x13c   : > { %631 = shalt.err (!%p628_p0)
}
 0x13d   : > { %505 = dma.vmem_to_hbm [thread:$0]  (%p765_p9), %s368_s22, 64, %s370_s24, %s354_s25  }
 0x13e PF: > { %s381_s13 = sand.u32 1, %s666_s15   ;;  %p512_p1 = pnand %p495_p12, %p772_p11 }
 0x13f   : > { %s382_s9 = scalar_lea.sflag [#allocation4], %s381_s13 }
 0x140   : > { %p513_p2 = pneg %p512_p1 }
 0x142   : > { %661 = dma.done.wait (%p513_p2), %s382_s9, 64  }
 0x143   : > { %663 = vsyncadd (%p513_p2), %s382_s9, 4294967232  ;;  %s20_s20 = sadd.s32 1, %s686_s20   ;;  %s855_s15 = smov %s670_s16 }
 0x144   : > { %p17_p3 = scmp.ge.s32.totalorder %s20_s20, 4   ;;  %s856_s16 = smov %s674_s17 }
 0x145   : > { %s857_s17 = smov %s770_s29  ;;  %s858_s18 = smov %s682_s19 }
 0x146   : > { %s859_s19 = smov %s861_s23  ;;  %19 = sbr.rel (!%p17_p3) target bundleno = 6 (0x6), region = 90 }
 0x14b   :  { %388 = vsyncpa [#allocation3], 1 }
 0x14c   :  { %390 = vsyncpa [#allocation3 + $0x1], 1 }
 0x14d   :  { %391 = vsyncpa [#allocation4], 1 }
 0x14e   :  { %393 = vsyncpa [#allocation4 + $0x1], 1 }

</bundles_post_ra>
